<compile_context>
chip_gen: v5e
topology: v5e:2x2
jax: 0.10.0
libtpu: 0.0.40
codegen_flags: <defaults>
</compile_context>

<pallas_src>
import math

import numpy as np

import jax
import jax.numpy as jnp
from jax.experimental import pallas as pl
from jax.experimental.pallas import tpu as pltpu


def _round_up(x: int, m: int) -> int:
    return ((x + m - 1) // m) * m


def _freq_phase_table(dim: int, max_period: float) -> np.ndarray:
    """Host-side (trace-time constant) table of shape (2, 1, dim):
       row 0 = per-lane frequency, row 1 = per-lane phase (pi/2 for the cos
       half, 0 for the sin half and the odd-dim pad lane)."""
    half = dim // 2
    freq = np.zeros((dim,), np.float32)
    phase = np.zeros((dim,), np.float32)
    if half > 0:
        f = np.exp(
            -math.log(max_period)
            * (np.arange(half, dtype=np.float32) / np.float32(half)))
        freq[:half] = f                 # cos half
        freq[half:2 * half] = f         # sin half
        phase[:half] = np.float32(math.pi / 2.0)
    # odd dim: trailing pad lane keeps freq = 0, phase = 0 -> sin(0) == 0.
    return np.stack([freq, phase], axis=0).reshape(2, 1, dim)


def _choose_block_rows(b: int, dim: int, max_block_rows: int,
                       vmem_budget_bytes: int = 12 << 20) -> int:
    """Batch-tile size: multiple of 8, >=4 grid steps when the batch permits
    (pipeline overlap + megacore split), >=256 rows when possible (HBM
    roofline), capped by a dim-aware double-buffered VMEM budget."""
    tb = _round_up(pl.cdiv(b, 4), 8)
    tb = min(max(tb, 256), max(max_block_rows, 8))
    # Double-buffered residency ~= 2 * tb * 4B * (128 [time lane-pad] + dim_pad).
    dim_pad = _round_up(max(dim, 128), 128)
    vmem_cap = vmem_budget_bytes // (8 * (dim_pad + 128))
    tb = min(tb, max(8, (vmem_cap // 8) * 8))
    tb = min(tb, _round_up(b, 8))
    return max(tb, 8)


def _sin_embed_kernel(time_ref, table_ref, out_ref):
    # time_ref:  (TB, 1)     f32 in VMEM
    # table_ref: (2, 1, dim) f32 in VMEM (grid-invariant freq / phase rows)
    # out_ref:   (TB, dim)   f32 in VMEM
    freq = table_ref[0]     # (1, dim)
    phase = table_ref[1]    # (1, dim)
    # cos(x) = sin(x + pi/2): one VPU broadcast-mul-add + one EUP sin pass,
    # one unmasked lane-dense store per tile.
    out_ref[...] = jnp.sin(time_ref[...] * freq + phase)


def sinusoidal_timestep_embedding(time: jax.Array, dim: int,
                                  max_period: float = 10000.0,
                                  block_rows: int = 1024) -> jax.Array:
    """Pallas equivalent of SinusoidalTimestepEmbedding.forward.

    Args:
      time: shape (B,), any numeric dtype (cast to float32, like .float()).
      dim: embedding dimension.
      max_period: sinusoid max period.
      block_rows: upper bound on the batch-tile size.
    Returns:
      (B, dim) float32 embeddings: [cos(args), sin(args)] (+ zero pad if odd).
    """
    b = time.shape[0]
    table = jnp.asarray(_freq_phase_table(dim, float(max_period)))
    time_f32 = time.astype(jnp.float32).reshape(b, 1)

    tb = _choose_block_rows(b, dim, block_rows)
    grid = (pl.cdiv(b, tb),)

    return pl.pallas_call(
        _sin_embed_kernel,
        out_shape=jax.ShapeDtypeStruct((b, dim), jnp.float32),
        grid=grid,
        in_specs=[
            pl.BlockSpec((tb, 1), lambda i: (i, 0)),
            pl.BlockSpec((2, 1, dim), lambda i: (0, 0, 0)),
        ],
        out_specs=pl.BlockSpec((tb, dim), lambda i: (i, 0)),
        compiler_params=pltpu.CompilerParams(
            dimension_semantics=("parallel",)),
    )(time_f32, table)


def _reference(time, dim, max_period=10000.0):
    half_dim = dim // 2
    exponents = jnp.arange(half_dim, dtype=jnp.float32) / half_dim
    freqs = jnp.exp(-math.log(max_period) * exponents)
    args = time.astype(jnp.float32)[:, None] * freqs[None, :]
    emb = jnp.concatenate([jnp.cos(args), jnp.sin(args)], axis=-1)
    if dim % 2 == 1:
        emb = jnp.pad(emb, ((0, 0), (0, 1)))
    return emb


if __name__ == "__main__":
    key = jax.random.PRNGKey(0)

    # Case 1: typical diffusion timesteps, even dim, single tile.
    batch, dim = 8, 32
    time = jax.random.randint(key, (batch,), minval=0, maxval=1000).astype(
        jnp.float32)
    out = jax.block_until_ready(sinusoidal_timestep_embedding(time, dim))
    ref = _reference(time, dim)
    assert out.shape == (batch, dim), out.shape
    assert out.dtype == jnp.float32, out.dtype
    # cos(x) computed as sin(x + pi/2); f32 rounding of the shifted argument
    # (args up to ~1e3) costs up to ~3e-5, hence the tolerance.
    assert jnp.allclose(out, ref, atol=2e-4, rtol=0.0), (
        float(jnp.max(jnp.abs(out - ref))))

    # Case 2: odd dim (zero-pad lane) and batch smaller than one tile
    # (ragged/masked last block -- no wrapper pad or slice-back).
    batch2, dim2 = 5, 33
    time2 = jax.random.randint(jax.random.PRNGKey(1), (batch2,),
                               minval=0, maxval=1000).astype(jnp.float32)
    out2 = jax.block_until_ready(sinusoidal_timestep_embedding(time2, dim2))
    ref2 = _reference(time2, dim2)
    assert out2.shape == (batch2, dim2), out2.shape
    assert jnp.allclose(out2, ref2, atol=2e-4, rtol=0.0), (
        float(jnp.max(jnp.abs(out2 - ref2))))

    # Case 3: multi-step grid with a ragged final block (20 rows, tb = 8
    # -> grid of 3, last block half-full) to exercise the masked writeback.
    batch3, dim3 = 20, 32
    time3 = jax.random.randint(jax.random.PRNGKey(2), (batch3,),
                               minval=0, maxval=1000).astype(jnp.float32)
    out3 = jax.block_until_ready(
        sinusoidal_timestep_embedding(time3, dim3, block_rows=8))
    ref3 = _reference(time3, dim3)
    assert out3.shape == (batch3, dim3), out3.shape
    assert jnp.allclose(out3, ref3, atol=2e-4, rtol=0.0), (
        float(jnp.max(jnp.abs(out3 - ref3))))

    print("KERNEL_OK")
</pallas_src>

<mosaic_0001>
module attributes {stable_mosaic.version = 11 : i64} {
  func.func @_sin_embed_kernel(%arg0: i32, %arg1: memref<8x1xf32, #tpu.memory_space<vmem>>, %arg2: memref<2x1x32xf32, #tpu.memory_space<vmem>>, %arg3: memref<8x32xf32, #tpu.memory_space<vmem>>) attributes {dimension_semantics = [#tpu.dimension_semantics<parallel>], iteration_bounds = array<i64: 1>, scalar_prefetch = 0 : i64, scratch_operands = 0 : i64, tpu.core_type = #tpu.core_type<tc>, window_params = [{transform_indices = @transform_0, window_bounds = array<i64: 8, 1>}, {pipeline_mode = #tpu.pipeline_mode<synchronous>, transform_indices = @transform_1, window_bounds = array<i64: 2, 1, 32>}, {transform_indices = @transform_2, window_bounds = array<i64: 8, 32>}]} {
    %c0 = arith.constant 0 : index
    %c0_0 = arith.constant 0 : index
    %c0_1 = arith.constant 0 : index
    %0 = vector.load %arg2[%c0, %c0_0, %c0_1] : memref<2x1x32xf32, #tpu.memory_space<vmem>>, vector<1x1x32xf32>
    %1 = vector.shape_cast %0 : vector<1x1x32xf32> to vector<1x32xf32>
    %c1 = arith.constant 1 : index
    %c0_2 = arith.constant 0 : index
    %c0_3 = arith.constant 0 : index
    %2 = vector.load %arg2[%c1, %c0_2, %c0_3] : memref<2x1x32xf32, #tpu.memory_space<vmem>>, vector<1x1x32xf32>
    %3 = vector.shape_cast %2 : vector<1x1x32xf32> to vector<1x32xf32>
    %c0_4 = arith.constant 0 : index
    %c0_5 = arith.constant 0 : index
    %4 = vector.load %arg1[%c0_4, %c0_5] : memref<8x1xf32, #tpu.memory_space<vmem>>, vector<8x1xf32>
    %5 = vector.broadcast %4 : vector<8x1xf32> to vector<8x32xf32>
    %6 = vector.broadcast %1 : vector<1x32xf32> to vector<8x32xf32>
    %7 = arith.mulf %5, %6 : vector<8x32xf32>
    %8 = vector.broadcast %3 : vector<1x32xf32> to vector<8x32xf32>
    %9 = arith.addf %7, %8 : vector<8x32xf32>
    %10 = math.sin %9 : vector<8x32xf32>
    %c0_6 = arith.constant 0 : index
    %c0_7 = arith.constant 0 : index
    %11 = vector.load %arg3[%c0_6, %c0_7] : memref<8x32xf32, #tpu.memory_space<vmem>>, vector<8x32xf32>
    tpu.vector_store %arg3[%c0_6, %c0_7], %10 {strides = array<i32>} : memref<8x32xf32, #tpu.memory_space<vmem>>, vector<8x32xf32>,
    return
  }
  func.func @transform_0(%arg0: i32) -> (i32, i32) {
    %c0_i32 = arith.constant 0 : i32
    %c0_i32_0 = arith.constant 0 : i32
    return %arg0, %c0_i32 : i32, i32
  }
  func.func @transform_1(%arg0: i32) -> (i32, i32, i32) {
    %c0_i32 = arith.constant 0 : i32
    %c0_i32_0 = arith.constant 0 : i32
    %c0_i32_1 = arith.constant 0 : i32
    %c0_i32_2 = arith.constant 0 : i32
    return %c0_i32, %c0_i32_0, %c0_i32_1 : i32, i32, i32
  }
  func.func @transform_2(%arg0: i32) -> (i32, i32) {
    %c0_i32 = arith.constant 0 : i32
    %c0_i32_0 = arith.constant 0 : i32
    return %arg0, %c0_i32 : i32, i32
  }
}

</mosaic_0001>

<bundles_post_ra>
// kernel: tpu_custom_call.1
= control target key start
LH: loop header
LB: loop body
LE: loop exit
PB: predicated region body
PF: predicated region fallthrough
CT: control target
= control target key end

     0   :  { %v243_v1 = vmov 0   ;;  %s339_s0 = inlined_call_operand.vmem [shape: f32[8,1], index: 0, kind: input, shape index: {}]   ;;  %s340_s1 = inlined_call_operand.vmem [shape: f32[2,1,32], index: 1, kind: input, shape index: {}]   ;;  %s341_s2 = inlined_call_operand.hbm [shape: f32[8,32], index: 2, kind: output, shape index: {}]  }
   0x1   :  { %v15_v0 = vld [vmem:[%s339_s0] sm:$0xff]  ;;  %214 = vset.pattern.permute.xlu0 %v243_v1 }
   0x2   :  { %18 = vperm.xlu0 %214, %v15_v0  }
   0x3   :  { %7 = vsyncpa [#allocation3], 0  ;;  %v215_v2 = vld [vmem:[%s340_s1] ss:$0 sm:$0xff]  ;;  %v216_v3 = vld [vmem:[%s340_s1 + $0x1] ss:$0 sm:$0xff] }
   0x4   :  { %v244_v18 = vmov 683565275   ;;  %v245_v20 = vmov 2475754826   ;;  %v246_v23 = vmov 2131351028  }
   0x5   :  { %v247_v26 = vmov 2102212464   ;;  %v248_v29 = vmov 920167782   ;;  %v249_v32 = vmov 1326507024  }
   0x6   :  { %s250_s0 = smov [#allocation2]   ;;  %s193_s17 = sshll.u32 %s341_s2, 4  ;;  %s194_s17 = int_to_ptr.hbm [resolvable:$true] %s193_s17 }
   0x7   :  { %s191_s1 = sshll.u32 %s250_s0, 4  ;;  %s192_s1 = int_to_ptr.vmem [resolvable:$true] %s191_s1 }
  0x74   :  { %v19_v4 = vpop.permute.xlu0 %18 }
  0x75   :  { %v24_v5 = vmul.f32 %v215_v2, %v19_v4 }
  0x77   :  { %v276_v6 = vadd.f32 %v216_v3, %v24_v5 }
  0x79   :  { %v32_v7 = vand.u32 2139095040, %v276_v6  ;;  %v29_v10 = vand.u32 2147483647, %v276_v6  ;;  %vm31_vm12 = vcmp.lt.s32.totalorder %v276_v6, 0 }
  0x7b   :  { %v33_v8 = vshrl.u32 %v32_v7, 23  ;;  %v36_v12 = vand.u32 8388607, %v29_v10  ;;  %vm30_vm13 = vcmp.le.f32.partialorder %v29_v10, 0.7853982 }
  0x7d   :  { %v203_v9 = vadd.s32 4294967169, %v33_v8  ;;  %v37_v16 = vor.u32 8388608, %v36_v12 }
  0x7f   :  { %v39_v11 = vadd.s32 1, %v203_v9  ;;  %v293_v39 = vshll.u32 %v37_v16, 8 }
  0x81   :  { %vm40_vm0 = vcmp.gt.s32.totalorder %v39_v11, 0  ;;  %v78_v48 = vand.u32 65535, %v293_v39  ;;  %v79_v53 = vshrl.u32 %v293_v39, 16 }
  0x82   :  { %v41_v13 = vsel %vm40_vm0, %v39_v11, 0 }
  0x83   :  { %v43_v14 = vand.u32 31, %v41_v13  ;;  %v284_v17 = vshrl.u32 %v41_v13, 5 }
  0x85   :  { %v282_v15 = vsub.s32 32, %v43_v14  ;;  %v46_v19 = vshll.u32 %v244_v18, %v43_v14  ;;  %v49_v21 = vshll.u32 %v245_v20, %v43_v14  ;;  %v52_v25 = vshll.u32 %v246_v23, %v43_v14 }
  0x86   :  { %v55_v28 = vshll.u32 %v247_v26, %v43_v14  ;;  %v58_v31 = vshll.u32 %v248_v29, %v43_v14  ;;  %vm61_vm1 = vcmp.lt.s32.totalorder %v284_v17, 1  ;;  %vm64_vm2 = vcmp.lt.s32.totalorder %v284_v17, 4 }
  0x87   :  { %v47_v22 = vshrl.u32 %v245_v20, %v282_v15  ;;  %v50_v24 = vshrl.u32 %v246_v23, %v282_v15  ;;  %v53_v27 = vshrl.u32 %v247_v26, %v282_v15  ;;  %v56_v30 = vshrl.u32 %v248_v29, %v282_v15 }
  0x88   :  { %v59_v33 = vshrl.u32 %v249_v32, %v282_v15  ;;  %vm63_vm3 = vcmp.lt.s32.totalorder %v284_v17, 3  ;;  %vm62_vm4 = vcmp.lt.s32.totalorder %v284_v17, 2  ;;  %v45_v12 = vshrl.u32 %v244_v18, %v282_v15 }
  0x89   :  { %v48_v34 = vor.u32 %v47_v22, %v46_v19  ;;  %v51_v35 = vor.u32 %v50_v24, %v49_v21  ;;  %v54_v36 = vor.u32 %v53_v27, %v52_v25  ;;  %v57_v37 = vor.u32 %v56_v30, %v55_v28 }
  0x8a   :  { %v60_v38 = vor.u32 %v59_v33, %v58_v31 }
  0x8b   :  { %v69_v40 = vsel %vm61_vm1, %v48_v34, %v51_v35  ;;  %v73_v41 = vsel %vm61_vm1, %v51_v35, %v54_v36  ;;  %v70_v42 = vsel %vm64_vm2, %v57_v37, 920167782  ;;  %v66_v5 = vsel %vm64_vm2, %v54_v36, 2102212464 }
  0x8c   :  { %v74_v43 = vsel %vm64_vm2, %v60_v38, 1326507024  ;;  %v71_v44 = vsel %vm63_vm3, %v54_v36, %v70_v42  ;;  %v65_v22 = vsel %vm61_vm1, %v45_v12, %v48_v34  ;;  %v67_v23 = vsel %vm63_vm3, %v51_v35, %v66_v5 }
  0x8d   :  { %v75_v45 = vsel %vm63_vm3, %v57_v37, %v74_v43  ;;  %v72_v46 = vsel %vm62_vm4, %v69_v40, %v71_v44  ;;  %v68_v15 = vsel %vm62_vm4, %v65_v22, %v67_v23  ;;  %vm184_vm1 = vcmask 261120  }
  0x8e   :  { %v76_v47 = vsel %vm62_vm4, %v73_v41, %v75_v45  ;;  %v102_v51 = vand.u32 65535, %v72_v46  ;;  %v103_v52 = vshrl.u32 %v72_v46, 16  ;;  %v122_v30 = vmul.u32 %v293_v39, %v68_v15 }
  0x8f   :  { %v80_v49 = vand.u32 65535, %v76_v47  ;;  %v81_v50 = vshrl.u32 %v76_v47, 16  ;;  %vm172_vm2 = vweird.f32 %v276_v6 }
  0x90   :  { %v105_v55 = vmul.u32 %v103_v52, %v78_v48  ;;  %v106_v57 = vmul.u32 %v102_v51, %v79_v53  ;;  %v104_v60 = vmul.u32 %v102_v51, %v78_v48  ;;  %v107_v63 = vmul.u32 %v103_v52, %v79_v53 }
  0x91   :  { %v83_v54 = vmul.u32 %v81_v50, %v78_v48  ;;  %v84_v56 = vmul.u32 %v80_v49, %v79_v53  ;;  %v82_v58 = vmul.u32 %v80_v49, %v78_v48  ;;  %v85_v62 = vmul.u32 %v81_v50, %v79_v53 }
  0x92   :  { %v108_v61 = vshll.u32 %v105_v55, 16  ;;  %v110_v2 = vshll.u32 %v106_v57, 16  ;;  %v109_v20 = vshrl.u32 %v105_v55, 16  ;;  %v111_v26 = vshrl.u32 %v106_v57, 16 }
  0x93   :  { %v86_v59 = vshll.u32 %v83_v54, 16  ;;  %v88_v0 = vshll.u32 %v84_v56, 16  ;;  %v87_v16 = vshrl.u32 %v83_v54, 16  ;;  %v89_v24 = vshrl.u32 %v84_v56, 16 }
  0x94   :  { %vm112_vm6 = vc.u32 %v104_v60, %v108_v61  ;;  %v114_v4 = vadd.s32 %v108_v61, %v104_v60 }
  0x95   :  { %vm90_vm5 = vc.u32 %v82_v58, %v86_v59  ;;  %v92_v3 = vadd.s32 %v86_v59, %v82_v58  ;;  %v113_v8 = vsel %vm112_vm6, 1, %v243_v1 }
  0x96   :  { %v91_v7 = vsel %vm90_vm5, 1, %v243_v1  ;;  %v115_v11 = vadd.s32 %v113_v8, %v107_v63  ;;  %vm116_vm8 = vc.u32 %v114_v4, %v110_v2  ;;  %v118_v28 = vadd.s32 %v114_v4, %v110_v2 }
  0x97   :  { %v93_v9 = vadd.s32 %v91_v7, %v85_v62  ;;  %vm94_vm7 = vc.u32 %v92_v3, %v88_v0  ;;  %v117_v14 = vsel %vm116_vm8, 1, %v243_v1 }
  0x98   :  { %v95_v13 = vsel %vm94_vm7, 1, %v243_v1  ;;  %v119_v21 = vadd.s32 %v117_v14, %v115_v11 }
  0x99   :  { %v97_v19 = vadd.s32 %v95_v13, %v93_v9 }
  0x9a   :  { %v120_v27 = vadd.s32 %v119_v21, %v109_v20 }
  0x9b   :  { %v98_v25 = vadd.s32 %v97_v19, %v87_v16 }
  0x9c   :  { %v121_v1 = vadd.s32 %v120_v27, %v111_v26 }
  0x9d   :  { %v99_v18 = vadd.s32 %v98_v25, %v89_v24 }
  0x9e   :  { %v125_v29 = vadd.s32 1, %v121_v1 }
  0x9f   :  { %vm124_vm9 = vc.u32 %v99_v18, %v118_v28  ;;  %v123_v42 = vadd.s32 %v118_v28, %v99_v18 }
  0xa0   :  { %v126_v31 = vsel %vm124_vm9, %v125_v29, %v121_v1 }
  0xa1   :  { %v127_v32 = vadd.s32 %v126_v31, %v122_v30 }
  0xa3   :  { %v128_v33 = vadd.s32 536870912, %v127_v32 }
  0xa5   :  { %v129_v34 = vshrl.u32 %v128_v33, 30 }
  0xa7   :  { %v130_v36 = vshll.u32 %v129_v34, 30  ;;  %v153_v55 = vsub.s32 4, %v129_v34 }
  0xa9   :  { %v131_v35 = vsub.s32 %v127_v32, %v130_v36  ;;  %v154_v60 = vsel %vm31_vm12, %v153_v55, %v129_v34 }
  0xaa   :  { %v156_v63 = vsel %vm30_vm13, 0, %v154_v60 }
  0xab   :  { %vm132_vm10 = vcmp.lt.s32.totalorder %v131_v35, 0  ;;  %v133_v37 = vsub.s32 0, %v131_v35  ;;  %v173_v5 = vadd.s32 3, %v156_v63 }
  0xad   :  { %v134_v38 = vsel %vm132_vm10, %v133_v37, %v131_v35  ;;  %v174_v11 = vand.u32 3, %v173_v5 }
  0xae   :  { %v135_v40 = vclz %v134_v38 }
  0xaf   :  { %vm176_vm14 = vcmp.eq.s32.totalorder %v174_v11, 0  ;;  %vm179_vm15 = vcmp.eq.s32.totalorder %v174_v11, 2  ;;  %vm175_vm0 = vcmp.lt.s32.totalorder %v174_v11, 2 }
  0xb0   :  { %v204_v41 = vadd.s32 4294967294, %v135_v40 }
  0xb2   :  { %vm205_vm11 = vcmp.lt.s32.totalorder %v204_v41, 0 }
  0xb3   :  { %v138_v17 = vsel %vm205_vm11, 0, %v204_v41 }
  0xb4   :  { %v139_v43 = vsub.s32 32, %v138_v17  ;;  %v143_v44 = vsub.s32 4294967266, %v138_v17  ;;  %v140_v45 = vshll.u32 %v131_v35, %v138_v17 }
  0xb6   :  { %v141_v46 = vshrl.u32 %v123_v42, %v139_v43  ;;  %v144_v47 = vadd.s32 127, %v143_v44 }
  0xb8   :  { %v142_v39 = vor.u32 %v141_v46, %v140_v45  ;;  %v145_v48 = vshll.u32 %v144_v47, 23 }
  0xba   :  { %v146_v49 = vor.u32 4788187, %v145_v48  ;;  %v149_v51 = vcvt.s32.f32 %v142_v39 }
  0xbc   :  { %v147_v50 = vand.u32 2147483647, %v146_v49 }
  0xbe   :  { %v150_v52 = vmul.f32 %v149_v51, %v147_v50 }
  0xc0   :  { %v151_v53 = vxor.u32 2147483648, %v150_v52 }
  0xc2   :  { %v152_v54 = vsel %vm31_vm12, %v151_v53, %v150_v52 }
  0xc3   :  { %v155_v56 = vsel %vm30_vm13, %v276_v6, %v152_v54 }
  0xc4   :  { %v157_v57 = vmul.f32 %v155_v56, %v155_v56 }
  0xc6   :  { %v158_v58 = vmul.f32 -0.001358992, %v157_v57  ;;  %v165_v59 = vmul.f32 -0.00019511016, %v157_v57 }
  0xc8   :  { %v159_v61 = vadd.f32 0.041655596, %v158_v58  ;;  %v166_v62 = vadd.f32 0.008332121, %v165_v59 }
  0xca   :  { %v160_v0 = vmul.f32 %v159_v61, %v157_v57  ;;  %v167_v2 = vmul.f32 %v166_v62, %v157_v57 }
  0xcc   :  { %v161_v3 = vadd.f32 -0.4999988, %v160_v0  ;;  %v168_v4 = vadd.f32 -0.16666654, %v167_v2 }
  0xce   :  { %v162_v7 = vmul.f32 %v161_v3, %v157_v57  ;;  %v169_v8 = vmul.f32 %v168_v4, %v157_v57 }
  0xd0   :  { %v163_v9 = vadd.f32 1.0, %v162_v7  ;;  %v170_v10 = vadd.f32 1.0, %v169_v8 }
  0xd2   :  { %v171_v12 = vmul.f32 %v170_v10, %v155_v56  ;;  %v180_v13 = vxor.u32 2147483648, %v163_v9 }
  0xd4   :  { %v177_v14 = vxor.u32 2147483648, %v171_v12  ;;  %v181_v19 = vsel %vm179_vm15, %v180_v13, %v171_v12 }
  0xd6   :  { %v178_v16 = vsel %vm176_vm14, %v163_v9, %v177_v14 }
  0xd7   :  { %v182_v20 = vsel %vm175_vm0, %v178_v16, %v181_v19 }
  0xd8   :  { %v183_v21 = vsel %vm172_vm2, nan, %v182_v20 }
  0xd9   :  { %185 = vst.msk [vmem:[#allocation2] sm:$0xff] %vm184_vm1, %v183_v21 }
  0xda   :  { %196 = dma.vmem_to_hbm [thread:$0]  %s192_s1, 128, %s194_s17, [#allocation3]  }
  0xdb   :  { %241 = dma.done.wait [#allocation3], 128  }
  0xdc   :  { %242 = vsyncadd [#allocation3], 4294967168 }
  0xdd   :  { %201 = vsyncpa [#allocation3], 1 }

</bundles_post_ra>
